<compile_context>
chip_gen: v6e
topology: v6e:2x2x1
jax: 0.10.0
libtpu: 0.0.40
codegen_flags: <defaults>
</compile_context>

<pallas_src>
import functools

import jax
import jax.numpy as jnp
import numpy as np
from jax.experimental import pallas as pl
from jax.experimental.pallas import tpu as pltpu


def _round_up(a, m):
    return (a + m - 1) // m * m


def patch_embed_kernel(x_ref, w_ref, b_ref, o_ref):
    """One row-tile of the patch-embedding matmul.

    x_ref : (TM, K)    flattened patches (compute dtype, K unpadded)
    w_ref : (K,  Ep)   projection weight (compute dtype, E zero-padded to 128)
    b_ref : (1,  Ep)   bias (f32)
    o_ref : (TM, Ep)   output tile (out dtype)
    """
    acc = jnp.dot(x_ref[...], w_ref[...], preferred_element_type=jnp.float32)
    o_ref[...] = (acc + b_ref[...]).astype(o_ref.dtype)


def patch_embed_forward(x_nchw, w_oihw, bias, patch_size, *, block_m=None,
                        compute_dtype=jnp.bfloat16, out_dtype=None):
    """PatchEmbed forward: NCHW image in, (B, num_patches, embed_dim) out.

    w_oihw       : PyTorch Conv2d weight layout (embed_dim, in_chans, pH, pW).
    bias         : (embed_dim,)
    compute_dtype: matmul operand dtype (bf16 recommended; accumulation stays f32).
    out_dtype    : output dtype (defaults to x dtype; use bf16 downstream).
    """
    if isinstance(patch_size, int):
        patch_size = (patch_size, patch_size)
    pH, pW = patch_size
    B, C, H, W = x_nchw.shape
    assert H % pH == 0 and W % pW == 0, "image size must be divisible by patch size"
    nH, nW = H // pH, W // pW
    E = w_oihw.shape[0]
    num_patches = nH * nW
    if out_dtype is None:
        out_dtype = x_nchw.dtype

    # ---- im2col as a SINGLE transpose pass (reshapes are free, row-major) ----
    # (B,C,H,W) -> (B,C,nH,pH,nW,pW) -> (B,nH,nW,pH,pW,C) -> (M, K)
    x6 = x_nchw.astype(compute_dtype).reshape(B, C, nH, pH, nW, pW)
    patches = jnp.transpose(x6, (0, 2, 4, 3, 5, 1)).reshape(
        B * num_patches, pH * pW * C)

    # Conv weight (E,C,pH,pW) -> (pH,pW,C,E) -> (K,E); matches the (ph,pw,c)
    # flattening order of the patch rows above.  Only the tiny weight/bias are
    # padded (E -> multiple of 128 for unmasked lane-dense vst on the output).
    K = pH * pW * C
    E_pad = _round_up(E, 128)
    w = jnp.transpose(w_oihw, (2, 3, 1, 0)).reshape(K, E)
    w = jnp.pad(w, ((0, 0), (0, E_pad - E))).astype(compute_dtype)
    b = jnp.pad(bias.reshape(1, E), ((0, 0), (0, E_pad - E))).astype(jnp.float32)

    M = B * num_patches

    # ---- row-tile selection ----
    # Multiple of 16 (safe for bf16 sublane packing, also a multiple of 8 for f32),
    # default 512 (~85% of HBM roofline), capped so the grid has >= 2 steps so
    # dimension_semantics=("parallel",) can split work across v7x's two TCs.
    row_mult = 16
    if block_m is None:
        block_m = 512
    block_m = min(block_m, max(row_mult, _round_up(-(-M // 2), row_mult)))
    block_m = _round_up(block_m, row_mult)

    grid = (pl.cdiv(M, block_m),)   # ragged last block; OOB rows are masked on write

    out = pl.pallas_call(
        patch_embed_kernel,
        out_shape=jax.ShapeDtypeStruct((M, E_pad), out_dtype),
        grid_spec=pltpu.PrefetchScalarGridSpec(
            num_scalar_prefetch=0,
            grid=grid,
            in_specs=[
                pl.BlockSpec((block_m, K), lambda i: (i, 0)),   # K == full dim (no pad)
                pl.BlockSpec((K, E_pad), lambda i: (0, 0)),     # weight resident
                pl.BlockSpec((1, E_pad), lambda i: (0, 0)),     # bias resident
            ],
            out_specs=pl.BlockSpec((block_m, E_pad), lambda i: (i, 0)),
        ),
        compiler_params=pltpu.CompilerParams(
            dimension_semantics=("parallel",),
            vmem_limit_bytes=48 * 1024 * 1024,
            # Hint: let XLA fuse the transpose/convert producer of `patches`
            # into the pallas_call input DMA instead of a separate HBM pass.
            allow_input_fusion=[True, False, False],
        ),
    )(patches, w, b)

    # Strip E padding (no-op when E % 128 == 0), reshape to (B, num_patches, E).
    if E_pad != E:
        out = out[:, :E]
    return out.reshape(B, num_patches, E)


def patch_embed_reference(x_nchw, w_oihw, bias, patch_size):
    """Pure-JAX reference matching the PyTorch module's forward (f32)."""
    if isinstance(patch_size, int):
        patch_size = (patch_size, patch_size)
    y = jax.lax.conv_general_dilated(
        x_nchw, w_oihw, window_strides=patch_size, padding='VALID',
        dimension_numbers=('NCHW', 'OIHW', 'NCHW'),
        precision=jax.lax.Precision.HIGHEST)
    y = y + bias.reshape(1, -1, 1, 1)
    B, E, nH, nW = y.shape
    return jnp.transpose(y.reshape(B, E, nH * nW), (0, 2, 1))


if __name__ == "__main__":
    # ---- Config 1: recommended production path (bf16 operands, bf16 output,
    #      lane-dense embed_dim). B=2, C=3, 32x32 image, 4x4 patches -> M=128.
    B, C, H, W, patch, E = 2, 3, 32, 32, 4, 128
    k1, k2, k3 = jax.random.split(jax.random.PRNGKey(0), 3)
    x = jax.random.normal(k1, (B, C, H, W), jnp.float32)
    w = 0.1 * jax.random.normal(k2, (E, C, patch, patch), jnp.float32)
    b = 0.1 * jax.random.normal(k3, (E,), jnp.float32)

    fwd = jax.jit(functools.partial(
        patch_embed_forward, patch_size=patch,
        compute_dtype=jnp.bfloat16, out_dtype=jnp.bfloat16))
    out = jax.block_until_ready(fwd(x, w, b))
    ref = patch_embed_reference(x, w, b, patch)
    assert out.shape == ref.shape
    np.testing.assert_allclose(np.asarray(out, dtype=np.float32), np.asarray(ref),
                               atol=1e-1, rtol=5e-2)

    # ---- Config 2: f32 exactness check; exercises ragged last M block
    #      (M=200, block_m=104) and padded embed dim (E=96 -> 128).
    B, C, H, W, patch, E = 2, 3, 40, 40, 4, 96
    k1, k2, k3 = jax.random.split(jax.random.PRNGKey(1), 3)
    x = jax.random.normal(k1, (B, C, H, W), jnp.float32)
    w = 0.1 * jax.random.normal(k2, (E, C, patch, patch), jnp.float32)
    b = 0.1 * jax.random.normal(k3, (E,), jnp.float32)
    out = patch_embed_forward(x, w, b, patch, compute_dtype=jnp.float32)
    out = jax.block_until_ready(out)
    ref = patch_embed_reference(x, w, b, patch)
    np.testing.assert_allclose(np.asarray(out), np.asarray(ref),
                               atol=1e-4, rtol=1e-4)

    print("KERNEL_OK")
</pallas_src>

<mosaic_0001>
module attributes {stable_mosaic.version = 11 : i64} {
  func.func @patch_embed_kernel(%arg0: i32, %arg1: memref<64x48xbf16, #tpu.memory_space<vmem>>, %arg2: memref<48x128xbf16, #tpu.memory_space<vmem>>, %arg3: memref<1x128xf32, #tpu.memory_space<vmem>>, %arg4: memref<64x128xbf16, #tpu.memory_space<vmem>>) attributes {dimension_semantics = [#tpu.dimension_semantics<parallel>], iteration_bounds = array<i64: 2>, scalar_prefetch = 0 : i64, scratch_operands = 0 : i64, tpu.core_type = #tpu.core_type<tc>, window_params = [{transform_indices = @transform_0, window_bounds = array<i64: 64, 48>}, {pipeline_mode = #tpu.pipeline_mode<synchronous>, transform_indices = @transform_1, window_bounds = array<i64: 48, 128>}, {pipeline_mode = #tpu.pipeline_mode<synchronous>, transform_indices = @transform_2, window_bounds = array<i64: 1, 128>}, {transform_indices = @transform_3, window_bounds = array<i64: 64, 128>}]} {
    %c0 = arith.constant 0 : index
    %c0_0 = arith.constant 0 : index
    %0 = vector.load %arg1[%c0, %c0_0] : memref<64x48xbf16, #tpu.memory_space<vmem>>, vector<64x48xbf16>
    %c0_1 = arith.constant 0 : index
    %c0_2 = arith.constant 0 : index
    %1 = vector.load %arg2[%c0_1, %c0_2] : memref<48x128xbf16, #tpu.memory_space<vmem>>, vector<48x128xbf16>
    %cst = arith.constant dense<0.000000e+00> : vector<64x128xf32>
    %2 = tpu.matmul %0, %1, %cst {dimension_numbers = #tpu.dot_dimension_numbers<[1], [0], [0], [1], [0, 0, 1, 1], [], []>} : vector<64x48xbf16>, vector<48x128xbf16>, vector<64x128xf32> -> vector<64x128xf32>
    %c0_3 = arith.constant 0 : index
    %c0_4 = arith.constant 0 : index
    %3 = vector.load %arg3[%c0_3, %c0_4] : memref<1x128xf32, #tpu.memory_space<vmem>>, vector<1x128xf32>
    %4 = vector.broadcast %3 : vector<1x128xf32> to vector<64x128xf32>
    %5 = arith.addf %2, %4 : vector<64x128xf32>
    %6 = arith.truncf %5 : vector<64x128xf32> to vector<64x128xbf16>
    %c0_5 = arith.constant 0 : index
    %c0_6 = arith.constant 0 : index
    %7 = vector.load %arg4[%c0_5, %c0_6] : memref<64x128xbf16, #tpu.memory_space<vmem>>, vector<64x128xbf16>
    tpu.vector_store %arg4[%c0_5, %c0_6], %6 {strides = array<i32>} : memref<64x128xbf16, #tpu.memory_space<vmem>>, vector<64x128xbf16>,
    return
  }
  func.func @transform_0(%arg0: i32) -> (i32, i32) {
    %c0_i32 = arith.constant 0 : i32
    %c0_i32_0 = arith.constant 0 : i32
    return %arg0, %c0_i32 : i32, i32
  }
  func.func @transform_1(%arg0: i32) -> (i32, i32) {
    %c0_i32 = arith.constant 0 : i32
    %c0_i32_0 = arith.constant 0 : i32
    %c0_i32_1 = arith.constant 0 : i32
    return %c0_i32, %c0_i32_0 : i32, i32
  }
  func.func @transform_2(%arg0: i32) -> (i32, i32) {
    %c0_i32 = arith.constant 0 : i32
    %c0_i32_0 = arith.constant 0 : i32
    %c0_i32_1 = arith.constant 0 : i32
    return %c0_i32, %c0_i32_0 : i32, i32
  }
  func.func @transform_3(%arg0: i32) -> (i32, i32) {
    %c0_i32 = arith.constant 0 : i32
    %c0_i32_0 = arith.constant 0 : i32
    return %arg0, %c0_i32 : i32, i32
  }
}

</mosaic_0001>

<bundles_post_ra>
// kernel: patch_embed_forward.1
= control target key start
LH: loop header
LB: loop body
LE: loop exit
PB: predicated region body
PF: predicated region fallthrough
CT: control target
= control target key end

     0   :  { %8 = vsyncpa [#allocation3], 0  ;;  %s767_s0 = inlined_call_operand.vmem [shape: bf16[128,48], index: 0, kind: input, shape index: {}]   ;;  %s768_s1 = inlined_call_operand.vmem [shape: bf16[48,128], index: 1, kind: input, shape index: {}]   ;;  %s769_s2 = inlined_call_operand.vmem [shape: f32[1,128], index: 2, kind: input, shape index: {}]   ;;  %s770_s3 = inlined_call_operand.hbm [shape: bf16[128,128], index: 3, kind: output, shape index: {}]  }
   0x1   :  { %10 = vsyncpa [#allocation3 + $0x1], 0  ;;  %s650_s12 = smov 0   ;;  %s652_s13 = smov 0  }
   0x2   :  { %s654_s14 = smov 0   ;;  %s656_s15 = smov 0  }
   0x3 LB: > { %s671_s16 = sadd.s32 4294967295, %s625_s15   ;;  %s426_s17 = sadd.s32 4294967294, %s625_s15   ;;  %s625_s15 = sphi %s656_s15, %s776_s15   ;;  %s621_s14 = sphi %s654_s14, %s775_s14   ;;  %s617_s13 = sphi %s652_s13, %s774_s13   ;;  %s613_s12 = sphi %s650_s12, %s773_s12  }
   0x4   : > { %s675_s18 = sadd.s32 1, %s625_s15   ;;  %s91_s19 = sadd.s32 1, %s621_s14 }
   0x5   : > { %s88_s20 = ssub.s32 %s625_s15, %s675_s18  ;;  %p101_p0 = scmp.ne.s32.totalorder %s621_s14, %s617_s13 }
   0x6   : > { %p89_p1 = scmp.eq.s32.totalorder %s88_s20, 0  ;;  %p102_p2 = scmp.eq.s32.totalorder %s671_s16, 1 }
   0x7   : > { %p107_p3 = scmp.ne.s32.totalorder %s617_s13, %s613_s12  ;;  %p108_p4 = scmp.eq.s32.totalorder %s426_s17, 1 }
   0x8   : > { %s686_s21 = scalar_select %p89_p1, %s621_s14, %s91_s19  }
   0x9   : > { %p688_p5 = por %p102_p2, %p101_p0  ;;  %p692_p6 = por %p108_p4, %p107_p3 }
   0xa   : > { %p429_p7 = scmp.ge.s32.totalorder %s625_s15, 1  ;;  %p141_p8 = scmp.lt.s32.totalorder %s625_s15, 3 }
   0xc   : > { %p142_p9 = pnand %p429_p7, %p141_p8 }
   0xd   : > { %s431_s26 = sshll.u32 (!%p142_p9), %s671_s16, 3  ;;  %s162_s8 = sand.u32 (!%p142_p9), 1, %s617_s13  }
   0xe   : > { %145 = sbr.rel (%p142_p9) target bundleno = 249 (0xf9), region = 32  ;;  %p166_p10 = scmp.lt.s32.totalorder (!%p142_p9), %s431_s26, 15 }
   0xf   : > { %s430_s9 = sshll.u32 (!%p142_p9), %s162_s8, 5  ;;  %s466_s20 = sshll.u32 (!%p142_p9), %s671_s16, 9 }
  0x10   : > { %s164_s17 = scalar_lea.vmem (!%p142_p9), [#allocation2], %s430_s9  ;;  %s727_s16 = scalar_lea.sflag (!%p142_p9), [#allocation3], %s162_s8 }
  0x11   : > { %s364_s19 = sshll.u32 (!%p142_p9), %s164_s17, 4  ;;  %s627_s28 = smov (!%p142_p9), [#allocation2]   ;;  %s718_s19 = int_to_ptr.vmem [resolvable:$true] %s364_s19 }
  0x12   : > { %s565_s27 = scalar_lea.vmem (!%p142_p9), %s718_s19, 512  ;;  %s569_s29 = sshll.u32 (!%p142_p9), %s627_s28, 4  ;;  %s570_s29 = int_to_ptr.vmem [resolvable:$false] %s569_s29 }
  0x13   : > { %v558_v0 = vld [vmem:[%s768_s1 + $0x10] sm:$0xff]   ;;  %v559_v1 = vld [vmem:[%s768_s1 + $0x8] sm:$0xff]   ;;  %s778_s26 = smov (!%p166_p10, %s431_s26), 15  ;;  %v560_v2 = vld [vmem:[%s768_s1] sm:$0xff]   ;;  %vm232_vm0 = vcmask 392192   ;;  %p566_p11 = scmp.ne.s32.totalorder %s718_s19, %s565_s27 }
  0x14   : > { %497 = vmatprep.subr.bf16.mxu0 %v558_v0  ;;  %511 = vmatprep.subr.bf16.mxu1 %v558_v0  ;;  %s432_s4 = sshll.u32 %s778_s26, 2  ;;  %v433_v9 = vld [vmem:[%s769_s2] ss:$0 sm:$0xff]  ;;  %s723_s26 = scalar_lea.hbm %s770_s3, %s466_s20 }
  0x15   : > { %498 = vmatpush3.bf16.msra.mxu0 %v558_v0  ;;  %514 = vmatpush3.bf16.msra.mxu1 %v558_v0  ;;  %s169_s7 = scalar_lea.vmem %s767_s0, %s432_s4  ;;  %p567_p12 = pnand %p566_p11, %p688_p5 }
  0x16   : > { %499 = vmatprep.subr.bf16.mxu0 %v559_v1  ;;  %512 = vmatprep.subr.bf16.mxu1 %v559_v1  ;;  %v561_v3 = vld [vmem:[%s169_s7] sm:$0xff]   ;;  %v562_v4 = vld [vmem:[%s169_s7 + $0x10] sm:$0xff]   ;;  %v563_v5 = vld [vmem:[%s169_s7 + $0x8] sm:$0xff]   ;;  %s571_s30 = scalar_lea.vmem %s570_s29, 1024  ;;  %p572_p0 = scmp.lt.s32.totalorder %s718_s19, %s570_s29 }
  0x17   : > { %503 = vmatprep.mubr.msk.bf16.mxu0 %vm232_vm0, %v561_v3  ;;  %507 = vmatprep.mubr.msk.bf16.mxu1 %vm232_vm0, %v562_v4  ;;  %v564_v6 = vld [vmem:[%s169_s7 + $0x18] sm:$0xff]   ;;  %p568_p13 = pneg %p567_p12  ;;  %p573_p1 = scmp.lt.s32.totalorder %s571_s30, %s565_s27 }
  0x19   : > { %500 = vmatpush3.bf16.msra.mxu0 %v559_v1  ;;  %515 = vmatpush3.bf16.msra.mxu1 %v559_v1  ;;  %p574_p2 = por %p573_p1, %p572_p0 }
  0x1a   : > { %501 = vmatprep.subr.bf16.mxu0 %v560_v2  ;;  %513 = vmatprep.subr.bf16.mxu1 %v560_v2 }
  0x1b   : > { %p575_p3 = pnand %p574_p2, %p568_p13 }
  0x1d   : > { %502 = vmatpush3.bf16.msra.mxu0 %v560_v2  ;;  %516 = vmatpush3.bf16.msra.mxu1 %v560_v2 }
  0x20   : > { %504 = vmatmul.mubr.msk.bf16.vlgmr.msra.gmra.mxu0 %vm232_vm0, %v563_v5  ;;  %508 = vmatmul.mubr.msk.bf16.vlgmr.msra.gmra.mxu1 %vm232_vm0, %v564_v6 }
  0xe0   : > { %v505_v7 = vpop.f32.mrf.mxu0  ;;  %v509_v8 = vpop.f32.mrf.mxu1 }
  0xe1   : > { %v288_v14 = vadd.f32 %v505_v7, %v433_v9  ;;  %v304_v15 = vadd.f32 %v509_v8, %v433_v9 }
  0xe2   : > { %v279_v10 = vpop.f32.mrf.mxu0  ;;  %v295_v11 = vpop.f32.mrf.mxu1 }
  0xe3   : > { %v280_v18 = vadd.f32 %v433_v9, %v279_v10  ;;  %v296_v19 = vadd.f32 %v433_v9, %v295_v11 }
  0xe4   : > { %v506_v12 = vpop.f32.mrf.mxu0  ;;  %v510_v13 = vpop.f32.mrf.mxu1 }
  0xe5   : > { %v291_v16 = vadd.f32 %v506_v12, %v433_v9  ;;  %v307_v17 = vadd.f32 %v510_v13, %v433_v9 }
  0xe6   : > { %v282_v20 = vpop.f32.mrf.mxu0  ;;  %v298_v21 = vpop.f32.mrf.mxu1 }
  0xe7   : > { %v475_v22 = vpack.c.bf16 %v291_v16, %v288_v14  ;;  %v485_v23 = vpack.c.bf16 %v307_v17, %v304_v15  ;;  %v283_v24 = vadd.f32 %v433_v9, %v282_v20  ;;  %v299_v25 = vadd.f32 %v433_v9, %v298_v21 }
  0xe9   : > { %487 = vst [vmem:[%s164_s17 + $0x8] sm:$0xff] %v475_v22   ;;  %489 = vst [vmem:[%s164_s17 + $0x18] sm:$0xff] %v485_v23   ;;  %v470_v26 = vpack.c.bf16 %v283_v24, %v280_v18  ;;  %v480_v27 = vpack.c.bf16 %v299_v25, %v296_v19 }
  0xeb   : > { %471 = vst [vmem:[%s164_s17] sm:$0xff] %v470_v26   ;;  %488 = vst [vmem:[%s164_s17 + $0x10] sm:$0xff] %v480_v27  }
  0xec   : > { %578 = shalt.err (!%p575_p3)
}
  0xed   : > { %s579_s4 = scalar_lea.hbm %s723_s26, 512  ;;  %s583_s7 = scalar_lea.hbm %s770_s3, 1024 }
  0xee   : > { %p580_p4 = scmp.ne.s32.totalorder %s723_s26, %s579_s4  ;;  %p584_p9 = scmp.lt.s32.totalorder %s723_s26, %s770_s3 }
  0xef   : > { %p585_p10 = scmp.lt.s32.totalorder %s583_s7, %s579_s4 }
  0xf0   : > { %p581_p7 = pnand %p580_p4, %p688_p5 }
  0xf1   : > { %p586_p11 = por %p585_p10, %p584_p9 }
  0xf2   : > { %p582_p8 = pneg %p581_p7 }
  0xf4   : > { %p587_p12 = pnand %p586_p11, %p582_p8 }
  0xf6   : > { %590 = shalt.err (!%p587_p12)
}
  0xf7   : > { %s628_s10 = smov 64   ;;  %s629_s11 = smov 4  }
  0xf8   : > { %517 = dma.vmem_to_hbm [thread:$0]  (%p688_p5), %s718_s19, 512, %s723_s26, %s727_s16, %s628_s10, %s628_s10, %s629_s11  }
  0xf9 PF: > { %p523_p13 = scmp.ge.s32.totalorder %s625_s15, 2  ;;  %s379_s17 = sand.u32 1, %s613_s12  }
  0xfa   : > { %s380_s20 = scalar_lea.sflag [#allocation3], %s379_s17 }
  0xfb   : > { %p520_p0 = pnand %p523_p13, %p692_p6 }
  0xfd   : > { %p521_p1 = pneg %p520_p0 }
  0xff   : > { %608 = dma.done.wait (%p521_p1), %s380_s20, 512  }
 0x100   : > { %610 = vsyncadd (%p521_p1), %s380_s20, 4294966784  ;;  %p13_p2 = scmp.ge.s32.totalorder %s675_s18, 4   ;;  %s773_s12 = smov %s617_s13 }
 0x101   : > { %s774_s13 = smov %s621_s14  ;;  %s775_s14 = smov %s686_s21 }
 0x102   : > { %s776_s15 = smov %s675_s18  ;;  %15 = sbr.rel (!%p13_p2) target bundleno = 3 (0x3), region = 67 }
 0x107   :  { %385 = vsyncpa [#allocation3], 1 }
 0x108   :  { %387 = vsyncpa [#allocation3 + $0x1], 1 }

</bundles_post_ra>
